<compile_context>
chip_gen: v5e
topology: v5e:2x2
jax: 0.10.0
libtpu: 0.0.40
codegen_flags: <defaults>
</compile_context>

<pallas_src>
import jax
import jax.numpy as jnp
from jax import lax
from jax.experimental import pallas as pl
from jax.experimental.pallas import tpu as pltpu

KH = KW = 3          # both convs: 3x3, stride 1, no padding
EPS = 1e-5           # torch.nn.BatchNorm2d default


def _round_up(a, m):
    return (a + m - 1) // m * m


def _make_kernel(W, RP, L1, L2):
    """One grid step: packed images (RP, Lx) -> wide conv2 output (RP, L2)."""
    ONES_ROW = KH * KW * RP        # start row of the constant-1 block

    def kernel(x_ref, w1_ref, w2_ref, o_ref, stk_ref):
        # x_ref : (1, RP, Lx)      batch-packed, zero-padded flattened images
        # w*_ref: (RP, 9*RP + 8)   BN-folded block-diag taps + bias column
        # o_ref : (1, RP, L2)      wide conv2 output (cropped in wrapper)
        # stk_ref: (9*RP + 8, L1)  im2col staging scratch (reused by both convs)
        x = x_ref[0]                                       # (RP, Lx)

        # Constant-1 block: lets the bias ride inside the MXU contraction.
        stk_ref[ONES_ROW:ONES_ROW + 8, :] = jnp.ones((8, L1), jnp.float32)

        # ---- conv1 (+ folded BN + bias): stack 9 shifted slices, 1 matmul ----
        for k in range(KH * KW):
            kh, kw = divmod(k, KW)
            s = kh * W + kw
            stk_ref[k * RP:(k + 1) * RP, :] = x[:, s:s + L1]
        y = jnp.dot(w1_ref[...], stk_ref[...],
                    preferred_element_type=jnp.float32)    # (RP, L1)
        y = jnp.clip(y, 0.0, 6.0)                           # relu6

        # ---- conv2 (+ folded BN + bias) --------------------------------------
        for k in range(KH * KW):
            kh, kw = divmod(k, KW)
            s = kh * W + kw
            stk_ref[k * RP:(k + 1) * RP, :L2] = y[:, s:s + L2]
        o_ref[0] = jnp.dot(w2_ref[...], stk_ref[:, :L2],
                           preferred_element_type=jnp.float32
                           ).astype(o_ref.dtype)

    return kernel


def prepare_params(w1_oihw, b1, w2_oihw, b2, running_mean, running_var,
                   gamma, beta, *, batch, num_splits=1):
    """One-time folding: BN -> conv, bias -> weight column, batch block-diag."""
    assert batch % num_splits == 0
    ng = batch // num_splits               # images packed per grid step
    c = w1_oihw.shape[0]
    rp = _round_up(ng * c, 8)              # packed sublane rows (8-aligned)
    kd = KH * KW * rp + 8                  # contraction depth (+ ones block)

    bn_scale = gamma / jnp.sqrt(running_var + EPS)
    bn_shift = beta - running_mean * bn_scale

    def pack(w_oihw, b):
        wf = w_oihw * bn_scale[:, None, None, None]        # scale per Cout
        bf = b * bn_scale + bn_shift
        wfull = jnp.zeros((rp, kd), jnp.float32)
        for k in range(KH * KW):
            kh, kw = divmod(k, KW)
            tap = wf[:, :, kh, kw]                          # (Cout, Cin)
            for n in range(ng):                             # block-diag over batch
                wfull = wfull.at[n * c:(n + 1) * c,
                                 k * rp + n * c:k * rp + (n + 1) * c].set(tap)
        # bias as one weight column multiplying the constant-1 row
        wfull = wfull.at[:ng * c, KH * KW * rp].set(jnp.tile(bf, ng))
        return wfull

    return pack(w1_oihw, b1), pack(w2_oihw, b2)


def merge_two_bn_forward(x_nchw, w1_packed, w2_packed, *, num_splits=1):
    """num_splits=1 for single-TC v5e/v6e; use 2 on v7x (2 TensorCores)."""
    N, C, H, W = x_nchw.shape
    G = num_splits
    assert N % G == 0
    Ng = N // G
    RP, KD = w1_packed.shape
    assert RP == _round_up(Ng * C, 8) and KD == KH * KW * RP + 8

    OH1, OW1 = H - KH + 1, W - KW + 1
    OH2, OW2 = OH1 - KH + 1, OW1 - KW + 1
    max_shift = (KH - 1) * W + (KW - 1)
    L2 = _round_up(OH2 * W, 128)           # lane-dense wide conv2 output
    L1 = _round_up(L2 + max_shift, 128)    # lane-dense wide conv1 length
    Lx = _round_up(L1 + max_shift, 128)    # lane-dense padded input length

    # Pack batch onto sublanes; flatten spatial onto lanes. No transposes.
    xp = x_nchw.reshape(G, Ng * C, H * W)
    xp = jnp.pad(xp, ((0, 0), (0, RP - Ng * C), (0, Lx - H * W)))

    out_wide = pl.pallas_call(
        _make_kernel(W, RP, L1, L2),
        out_shape=jax.ShapeDtypeStruct((G, RP, L2), jnp.float32),
        grid_spec=pltpu.PrefetchScalarGridSpec(
            num_scalar_prefetch=0,
            grid=(G,),
            in_specs=[
                pl.BlockSpec((1, RP, Lx), lambda g: (g, 0, 0)),
                pl.BlockSpec((RP, KD), lambda g: (0, 0)),
                pl.BlockSpec((RP, KD), lambda g: (0, 0)),
            ],
            out_specs=pl.BlockSpec((1, RP, L2), lambda g: (g, 0, 0)),
            scratch_shapes=[pltpu.VMEM((KD, L1), jnp.float32)],
        ),
        compiler_params=pltpu.CompilerParams(
            dimension_semantics=("parallel",)),
    )(xp, w1_packed, w2_packed)

    # Drop pad rows, junk lane columns and junk right-edge columns (XLA glue).
    out = out_wide[:, :Ng * C, :OH2 * W].reshape(N, C, OH2, W)[:, :, :, :OW2]
    return out


def _reference(x, w1, b1, w2, b2, mean, var, gamma, beta):
    dn = ("NCHW", "OIHW", "NCHW")

    def bn(v):
        inv = gamma / jnp.sqrt(var + EPS)
        return (v - mean[None, :, None, None]) * inv[None, :, None, None] \
            + beta[None, :, None, None]

    y = lax.conv_general_dilated(x, w1, (1, 1), "VALID", dimension_numbers=dn)
    y = y + b1[None, :, None, None]
    y = bn(y)
    y = jnp.clip(y, 0.0, 6.0)
    y = lax.conv_general_dilated(y, w2, (1, 1), "VALID", dimension_numbers=dn)
    y = y + b2[None, :, None, None]
    return bn(y)


if __name__ == "__main__":
    key = jax.random.PRNGKey(0)
    ks = jax.random.split(key, 9)

    N, C, H, W = 2, 3, 16, 16            # module fixes C=3, 3x3 convs
    x = jax.random.normal(ks[0], (N, C, H, W), jnp.float32)

    # Conv parameters (PyTorch layout OIHW), deterministic init.
    bound = 1.0 / (C * KH * KW) ** 0.5
    w1 = jax.random.uniform(ks[1], (C, C, KH, KW), jnp.float32, -bound, bound)
    b1 = jax.random.uniform(ks[2], (C,), jnp.float32, -bound, bound)
    w2 = jax.random.uniform(ks[3], (C, C, KH, KW), jnp.float32, -bound, bound)
    b2 = jax.random.uniform(ks[4], (C,), jnp.float32, -bound, bound)

    # BatchNorm2d(3, affine=True) eval-mode stats/params (torch.rand-like).
    running_mean = jax.random.uniform(ks[5], (C,), jnp.float32)
    running_var = jax.random.uniform(ks[6], (C,), jnp.float32)
    gamma = jax.random.uniform(ks[7], (C,), jnp.float32)
    beta = jax.random.uniform(ks[8], (C,), jnp.float32)

    NUM_SPLITS = 1   # single step for single-TC v5e/v6e; set to 2 on v7x.
    w1p, w2p = prepare_params(w1, b1, w2, b2, running_mean, running_var,
                              gamma, beta, batch=N, num_splits=NUM_SPLITS)

    out = merge_two_bn_forward(x, w1p, w2p, num_splits=NUM_SPLITS)
    out = jax.block_until_ready(out)

    ref = _reference(x, w1, b1, w2, b2, running_mean, running_var, gamma, beta)
    ref = jax.block_until_ready(ref)

    assert out.shape == (N, C, H - 4, W - 4), out.shape
    assert jnp.allclose(out, ref, rtol=1e-4, atol=1e-4), \
        float(jnp.max(jnp.abs(out - ref)))
    print("KERNEL_OK")
</pallas_src>

<mosaic_0001>
module attributes {stable_mosaic.version = 11 : i64} {
  func.func @kernel(%arg0: i32, %arg1: memref<1x8x512xf32, #tpu.memory_space<vmem>>, %arg2: memref<8x80xf32, #tpu.memory_space<vmem>>, %arg3: memref<8x80xf32, #tpu.memory_space<vmem>>, %arg4: memref<1x8x256xf32, #tpu.memory_space<vmem>>, %arg5: memref<80x384xf32, #tpu.memory_space<vmem>>) attributes {dimension_semantics = [#tpu.dimension_semantics<parallel>], iteration_bounds = array<i64: 1>, scalar_prefetch = 0 : i64, scratch_operands = 1 : i64, tpu.core_type = #tpu.core_type<tc>, window_params = [{transform_indices = @transform_0, window_bounds = array<i64: 1, 8, 512>}, {pipeline_mode = #tpu.pipeline_mode<synchronous>, transform_indices = @transform_1, window_bounds = array<i64: 8, 80>}, {pipeline_mode = #tpu.pipeline_mode<synchronous>, transform_indices = @transform_2, window_bounds = array<i64: 8, 80>}, {transform_indices = @transform_3, window_bounds = array<i64: 1, 8, 256>}]} {
    %c0 = arith.constant 0 : index
    %c0_0 = arith.constant 0 : index
    %c0_1 = arith.constant 0 : index
    %0 = vector.load %arg1[%c0, %c0_0, %c0_1] : memref<1x8x512xf32, #tpu.memory_space<vmem>>, vector<1x8x512xf32>
    %1 = vector.shape_cast %0 : vector<1x8x512xf32> to vector<8x512xf32>
    %cst = arith.constant 1.000000e+00 : f32
    %2 = vector.broadcast %cst : f32 to vector<8x384xf32>
    %c72 = arith.constant 72 : index
    %c0_2 = arith.constant 0 : index
    %3 = vector.load %arg5[%c72, %c0_2] : memref<80x384xf32, #tpu.memory_space<vmem>>, vector<8x384xf32>
    tpu.vector_store %arg5[%c72, %c0_2], %2 {strides = array<i32>} : memref<80x384xf32, #tpu.memory_space<vmem>>, vector<8x384xf32>,
    %4 = vector.extract_strided_slice %1 {offsets = [0, 0], sizes = [8, 384], strides = [1, 1]} : vector<8x512xf32> to vector<8x384xf32>
    %c0_3 = arith.constant 0 : index
    %c0_4 = arith.constant 0 : index
    %5 = vector.load %arg5[%c0_3, %c0_4] : memref<80x384xf32, #tpu.memory_space<vmem>>, vector<8x384xf32>
    tpu.vector_store %arg5[%c0_3, %c0_4], %4 {strides = array<i32>} : memref<80x384xf32, #tpu.memory_space<vmem>>, vector<8x384xf32>,
    %6 = vector.extract_strided_slice %1 {offsets = [0, 1], sizes = [8, 384], strides = [1, 1]} : vector<8x512xf32> to vector<8x384xf32>
    %c8 = arith.constant 8 : index
    %c0_5 = arith.constant 0 : index
    %7 = vector.load %arg5[%c8, %c0_5] : memref<80x384xf32, #tpu.memory_space<vmem>>, vector<8x384xf32>
    tpu.vector_store %arg5[%c8, %c0_5], %6 {strides = array<i32>} : memref<80x384xf32, #tpu.memory_space<vmem>>, vector<8x384xf32>,
    %8 = vector.extract_strided_slice %1 {offsets = [0, 2], sizes = [8, 384], strides = [1, 1]} : vector<8x512xf32> to vector<8x384xf32>
    %c16 = arith.constant 16 : index
    %c0_6 = arith.constant 0 : index
    %9 = vector.load %arg5[%c16, %c0_6] : memref<80x384xf32, #tpu.memory_space<vmem>>, vector<8x384xf32>
    tpu.vector_store %arg5[%c16, %c0_6], %8 {strides = array<i32>} : memref<80x384xf32, #tpu.memory_space<vmem>>, vector<8x384xf32>,
    %10 = vector.extract_strided_slice %1 {offsets = [0, 16], sizes = [8, 384], strides = [1, 1]} : vector<8x512xf32> to vector<8x384xf32>
    %c24 = arith.constant 24 : index
    %c0_7 = arith.constant 0 : index
    %11 = vector.load %arg5[%c24, %c0_7] : memref<80x384xf32, #tpu.memory_space<vmem>>, vector<8x384xf32>
    tpu.vector_store %arg5[%c24, %c0_7], %10 {strides = array<i32>} : memref<80x384xf32, #tpu.memory_space<vmem>>, vector<8x384xf32>,
    %12 = vector.extract_strided_slice %1 {offsets = [0, 17], sizes = [8, 384], strides = [1, 1]} : vector<8x512xf32> to vector<8x384xf32>
    %c32 = arith.constant 32 : index
    %c0_8 = arith.constant 0 : index
    %13 = vector.load %arg5[%c32, %c0_8] : memref<80x384xf32, #tpu.memory_space<vmem>>, vector<8x384xf32>
    tpu.vector_store %arg5[%c32, %c0_8], %12 {strides = array<i32>} : memref<80x384xf32, #tpu.memory_space<vmem>>, vector<8x384xf32>,
    %14 = vector.extract_strided_slice %1 {offsets = [0, 18], sizes = [8, 384], strides = [1, 1]} : vector<8x512xf32> to vector<8x384xf32>
    %c40 = arith.constant 40 : index
    %c0_9 = arith.constant 0 : index
    %15 = vector.load %arg5[%c40, %c0_9] : memref<80x384xf32, #tpu.memory_space<vmem>>, vector<8x384xf32>
    tpu.vector_store %arg5[%c40, %c0_9], %14 {strides = array<i32>} : memref<80x384xf32, #tpu.memory_space<vmem>>, vector<8x384xf32>,
    %16 = vector.extract_strided_slice %1 {offsets = [0, 32], sizes = [8, 384], strides = [1, 1]} : vector<8x512xf32> to vector<8x384xf32>
    %c48 = arith.constant 48 : index
    %c0_10 = arith.constant 0 : index
    %17 = vector.load %arg5[%c48, %c0_10] : memref<80x384xf32, #tpu.memory_space<vmem>>, vector<8x384xf32>
    tpu.vector_store %arg5[%c48, %c0_10], %16 {strides = array<i32>} : memref<80x384xf32, #tpu.memory_space<vmem>>, vector<8x384xf32>,
    %18 = vector.extract_strided_slice %1 {offsets = [0, 33], sizes = [8, 384], strides = [1, 1]} : vector<8x512xf32> to vector<8x384xf32>
    %c56 = arith.constant 56 : index
    %c0_11 = arith.constant 0 : index
    %19 = vector.load %arg5[%c56, %c0_11] : memref<80x384xf32, #tpu.memory_space<vmem>>, vector<8x384xf32>
    tpu.vector_store %arg5[%c56, %c0_11], %18 {strides = array<i32>} : memref<80x384xf32, #tpu.memory_space<vmem>>, vector<8x384xf32>,
    %20 = vector.extract_strided_slice %1 {offsets = [0, 34], sizes = [8, 384], strides = [1, 1]} : vector<8x512xf32> to vector<8x384xf32>
    %c64 = arith.constant 64 : index
    %c0_12 = arith.constant 0 : index
    %21 = vector.load %arg5[%c64, %c0_12] : memref<80x384xf32, #tpu.memory_space<vmem>>, vector<8x384xf32>
    tpu.vector_store %arg5[%c64, %c0_12], %20 {strides = array<i32>} : memref<80x384xf32, #tpu.memory_space<vmem>>, vector<8x384xf32>,
    %c0_13 = arith.constant 0 : index
    %c0_14 = arith.constant 0 : index
    %22 = vector.load %arg2[%c0_13, %c0_14] : memref<8x80xf32, #tpu.memory_space<vmem>>, vector<8x80xf32>
    %c0_15 = arith.constant 0 : index
    %c0_16 = arith.constant 0 : index
    %23 = vector.load %arg5[%c0_15, %c0_16] : memref<80x384xf32, #tpu.memory_space<vmem>>, vector<80x384xf32>
    %cst_17 = arith.constant dense<0.000000e+00> : vector<8x384xf32>
    %24 = tpu.matmul %22, %23, %cst_17 {dimension_numbers = #tpu.dot_dimension_numbers<[1], [0], [0], [1], [0, 0, 1, 1], [], []>} : vector<8x80xf32>, vector<80x384xf32>, vector<8x384xf32> -> vector<8x384xf32>
    %cst_18 = arith.constant 0.000000e+00 : f32
    %cst_19 = arith.constant 6.000000e+00 : f32
    %25 = vector.broadcast %cst_18 : f32 to vector<8x384xf32>
    %26 = arith.maximumf %25, %24 : vector<8x384xf32>
    %27 = vector.broadcast %cst_19 : f32 to vector<8x384xf32>
    %28 = arith.minimumf %27, %26 : vector<8x384xf32>
    %29 = vector.extract_strided_slice %28 {offsets = [0, 0], sizes = [8, 256], strides = [1, 1]} : vector<8x384xf32> to vector<8x256xf32>
    %c0_20 = arith.constant 0 : index
    %c0_21 = arith.constant 0 : index
    %30 = vector.load %arg5[%c0_20, %c0_21] : memref<80x384xf32, #tpu.memory_space<vmem>>, vector<8x256xf32>
    tpu.vector_store %arg5[%c0_20, %c0_21], %29 {strides = array<i32>} : memref<80x384xf32, #tpu.memory_space<vmem>>, vector<8x256xf32>,
    %31 = vector.extract_strided_slice %28 {offsets = [0, 1], sizes = [8, 256], strides = [1, 1]} : vector<8x384xf32> to vector<8x256xf32>
    %c8_22 = arith.constant 8 : index
    %c0_23 = arith.constant 0 : index
    %32 = vector.load %arg5[%c8_22, %c0_23] : memref<80x384xf32, #tpu.memory_space<vmem>>, vector<8x256xf32>
    tpu.vector_store %arg5[%c8_22, %c0_23], %31 {strides = array<i32>} : memref<80x384xf32, #tpu.memory_space<vmem>>, vector<8x256xf32>,
    %33 = vector.extract_strided_slice %28 {offsets = [0, 2], sizes = [8, 256], strides = [1, 1]} : vector<8x384xf32> to vector<8x256xf32>
    %c16_24 = arith.constant 16 : index
    %c0_25 = arith.constant 0 : index
    %34 = vector.load %arg5[%c16_24, %c0_25] : memref<80x384xf32, #tpu.memory_space<vmem>>, vector<8x256xf32>
    tpu.vector_store %arg5[%c16_24, %c0_25], %33 {strides = array<i32>} : memref<80x384xf32, #tpu.memory_space<vmem>>, vector<8x256xf32>,
    %35 = vector.extract_strided_slice %28 {offsets = [0, 16], sizes = [8, 256], strides = [1, 1]} : vector<8x384xf32> to vector<8x256xf32>
    %c24_26 = arith.constant 24 : index
    %c0_27 = arith.constant 0 : index
    %36 = vector.load %arg5[%c24_26, %c0_27] : memref<80x384xf32, #tpu.memory_space<vmem>>, vector<8x256xf32>
    tpu.vector_store %arg5[%c24_26, %c0_27], %35 {strides = array<i32>} : memref<80x384xf32, #tpu.memory_space<vmem>>, vector<8x256xf32>,
    %37 = vector.extract_strided_slice %28 {offsets = [0, 17], sizes = [8, 256], strides = [1, 1]} : vector<8x384xf32> to vector<8x256xf32>
    %c32_28 = arith.constant 32 : index
    %c0_29 = arith.constant 0 : index
    %38 = vector.load %arg5[%c32_28, %c0_29] : memref<80x384xf32, #tpu.memory_space<vmem>>, vector<8x256xf32>
    tpu.vector_store %arg5[%c32_28, %c0_29], %37 {strides = array<i32>} : memref<80x384xf32, #tpu.memory_space<vmem>>, vector<8x256xf32>,
    %39 = vector.extract_strided_slice %28 {offsets = [0, 18], sizes = [8, 256], strides = [1, 1]} : vector<8x384xf32> to vector<8x256xf32>
    %c40_30 = arith.constant 40 : index
    %c0_31 = arith.constant 0 : index
    %40 = vector.load %arg5[%c40_30, %c0_31] : memref<80x384xf32, #tpu.memory_space<vmem>>, vector<8x256xf32>
    tpu.vector_store %arg5[%c40_30, %c0_31], %39 {strides = array<i32>} : memref<80x384xf32, #tpu.memory_space<vmem>>, vector<8x256xf32>,
    %41 = vector.extract_strided_slice %28 {offsets = [0, 32], sizes = [8, 256], strides = [1, 1]} : vector<8x384xf32> to vector<8x256xf32>
    %c48_32 = arith.constant 48 : index
    %c0_33 = arith.constant 0 : index
    %42 = vector.load %arg5[%c48_32, %c0_33] : memref<80x384xf32, #tpu.memory_space<vmem>>, vector<8x256xf32>
    tpu.vector_store %arg5[%c48_32, %c0_33], %41 {strides = array<i32>} : memref<80x384xf32, #tpu.memory_space<vmem>>, vector<8x256xf32>,
    %43 = vector.extract_strided_slice %28 {offsets = [0, 33], sizes = [8, 256], strides = [1, 1]} : vector<8x384xf32> to vector<8x256xf32>
    %c56_34 = arith.constant 56 : index
    %c0_35 = arith.constant 0 : index
    %44 = vector.load %arg5[%c56_34, %c0_35] : memref<80x384xf32, #tpu.memory_space<vmem>>, vector<8x256xf32>
    tpu.vector_store %arg5[%c56_34, %c0_35], %43 {strides = array<i32>} : memref<80x384xf32, #tpu.memory_space<vmem>>, vector<8x256xf32>,
    %45 = vector.extract_strided_slice %28 {offsets = [0, 34], sizes = [8, 256], strides = [1, 1]} : vector<8x384xf32> to vector<8x256xf32>
    %c64_36 = arith.constant 64 : index
    %c0_37 = arith.constant 0 : index
    %46 = vector.load %arg5[%c64_36, %c0_37] : memref<80x384xf32, #tpu.memory_space<vmem>>, vector<8x256xf32>
    tpu.vector_store %arg5[%c64_36, %c0_37], %45 {strides = array<i32>} : memref<80x384xf32, #tpu.memory_space<vmem>>, vector<8x256xf32>,
    %c0_38 = arith.constant 0 : index
    %c0_39 = arith.constant 0 : index
    %47 = vector.load %arg3[%c0_38, %c0_39] : memref<8x80xf32, #tpu.memory_space<vmem>>, vector<8x80xf32>
    %c0_40 = arith.constant 0 : index
    %c0_41 = arith.constant 0 : index
    %48 = vector.load %arg5[%c0_40, %c0_41] : memref<80x384xf32, #tpu.memory_space<vmem>>, vector<80x256xf32>
    %cst_42 = arith.constant dense<0.000000e+00> : vector<8x256xf32>
    %49 = tpu.matmul %47, %48, %cst_42 {dimension_numbers = #tpu.dot_dimension_numbers<[1], [0], [0], [1], [0, 0, 1, 1], [], []>} : vector<8x80xf32>, vector<80x256xf32>, vector<8x256xf32> -> vector<8x256xf32>
    %c0_43 = arith.constant 0 : index
    %c0_44 = arith.constant 0 : index
    %c0_45 = arith.constant 0 : index
    %50 = vector.load %arg4[%c0_43, %c0_44, %c0_45] : memref<1x8x256xf32, #tpu.memory_space<vmem>>, vector<1x8x256xf32>
    %51 = vector.shape_cast %50 : vector<1x8x256xf32> to vector<8x256xf32>
    %52 = vector.shape_cast %49 : vector<8x256xf32> to vector<1x8x256xf32>
    tpu.vector_store %arg4[%c0_43, %c0_44, %c0_45], %52 {strides = array<i32>} : memref<1x8x256xf32, #tpu.memory_space<vmem>>, vector<1x8x256xf32>,
    return
  }
  func.func @transform_0(%arg0: i32) -> (i32, i32, i32) {
    %c0_i32 = arith.constant 0 : i32
    %c0_i32_0 = arith.constant 0 : i32
    %c0_i32_1 = arith.constant 0 : i32
    return %arg0, %c0_i32, %c0_i32_0 : i32, i32, i32
  }
  func.func @transform_1(%arg0: i32) -> (i32, i32) {
    %c0_i32 = arith.constant 0 : i32
    %c0_i32_0 = arith.constant 0 : i32
    %c0_i32_1 = arith.constant 0 : i32
    return %c0_i32, %c0_i32_0 : i32, i32
  }
  func.func @transform_2(%arg0: i32) -> (i32, i32) {
    %c0_i32 = arith.constant 0 : i32
    %c0_i32_0 = arith.constant 0 : i32
    %c0_i32_1 = arith.constant 0 : i32
    return %c0_i32, %c0_i32_0 : i32, i32
  }
  func.func @transform_3(%arg0: i32) -> (i32, i32, i32) {
    %c0_i32 = arith.constant 0 : i32
    %c0_i32_0 = arith.constant 0 : i32
    %c0_i32_1 = arith.constant 0 : i32
    return %arg0, %c0_i32, %c0_i32_0 : i32, i32, i32
  }
}

</mosaic_0001>

<bundles_post_ra>
// kernel: tpu_custom_call.1
= control target key start
LH: loop header
LB: loop body
LE: loop exit
PB: predicated region body
PF: predicated region fallthrough
CT: control target
= control target key end

     0   :  { %8 = vsyncpa [#allocation4], 0  ;;  %s887_s0 = inlined_call_operand.hbm [shape: f32[1,8,512], index: 0, kind: input, shape index: {}]   ;;  %s888_s1 = inlined_call_operand.hbm [shape: f32[8,80], index: 1, kind: input, shape index: {}]   ;;  %s889_s2 = inlined_call_operand.hbm [shape: f32[8,80], index: 2, kind: input, shape index: {}]   ;;  %s890_s3 = inlined_call_operand.hbm [shape: f32[1,8,256], index: 3, kind: output, shape index: {}]  }
   0x1   :  { %9 = vsyncpa [#allocation7], 0  ;;  %s27_s14 = sshll.u32 %s888_s1, 4  ;;  %s28_s14 = int_to_ptr.hbm [resolvable:$true] %s27_s14 }
   0x2   :  { %10 = vsyncpa [#allocation5], 0  ;;  %s740_s15 = smov [#allocation6]   ;;  %s16_s19 = sshll.u32 %s887_s0, 4  ;;  %s17_s19 = int_to_ptr.hbm [resolvable:$true] %s16_s19 }
   0x3   :  { %s29_s16 = sshll.u32 %s740_s15, 4  ;;  %s741_s20 = smov [#allocation3]   ;;  %s30_s16 = int_to_ptr.vmem [resolvable:$true] %s29_s16 }
   0x4   :  { %32 = dma.hbm_to_vmem [thread:$0]  %s28_s14, 128, %s30_s16, [#allocation7]  }
   0x5   :  { %s18_s21 = sshll.u32 %s741_s20, 4  ;;  %s38_s24 = sshll.u32 %s889_s2, 4  ;;  %s19_s21 = int_to_ptr.vmem [resolvable:$true] %s18_s21  ;;  %s39_s24 = int_to_ptr.hbm [resolvable:$true] %s38_s24 }
   0x6   :  { %21 = dma.hbm_to_vmem [thread:$0]  %s17_s19, 512, %s19_s21, [#allocation4]  }
   0x7   :  { %s742_s1 = smov [#allocation8]  }
   0x8   :  { %s40_s25 = sshll.u32 %s742_s1, 4  ;;  %s41_s25 = int_to_ptr.vmem [resolvable:$true] %s40_s25 }
   0x9   :  { %43 = dma.hbm_to_vmem [thread:$0]  %s39_s24, 128, %s41_s25, [#allocation7]  }
   0xa   :  { %734 = dma.done.wait [#allocation4], 512  }
   0xb   :  { %735 = vsyncadd [#allocation4], 4294966784 }
   0xc   :  { %736 = dma.done.wait [#allocation7], 256  }
   0xd   :  { %737 = vsyncadd [#allocation7], 4294967040  ;;  %v782_v0 = vld [vmem:[#allocation3] sm:$0xff]  ;;  %v784_v1 = vld [vmem:[#allocation3 + $0x8] sm:$0xff]  ;;  %s743_s0 = smov 95   ;;  %s744_s2 = smov 94  }
   0xe   :  { %v528_v2 = vpack.i.bf16 %v784_v1, %v782_v0  ;;  %v790_v3 = vld [vmem:[#allocation3 + $0x10] sm:$0xff]  ;;  %v59_v4 = vld [vmem:[#allocation3 + $0x18] sm:$0xff]  ;;  %s745_s26 = smov 96   ;;  %s746_s27 = smov 110   ;;  %v751_v6 = vmov 1.0   ;;  %vm204_vm0 = vcmask 769024  }
   0xf   :  { %v533_v5 = vpack.i.bf16 %v59_v4, %v790_v3  ;;  %s747_s28 = smov 111   ;;  %s748_s29 = smov 112   ;;  %255 = vmatpush.msra.mxu0 %v751_v6  ;;  %275 = vmatpush.msra.mxu1 %v751_v6  ;;  %vm186_vm1 = vcmask 777216   ;;  %vm168_vm2 = vcmask 785408   ;;  %vm150_vm3 = vcmask 900096  }
  0x10   :  { %529 = vrot.lane.b32.xlu1 %v528_v2, %s743_s0  ;;  %519 = vrot.lane.b32.xlu0 %v528_v2, %s744_s2  ;;  %s749_s30 = smov 126   ;;  %s750_s4 = smov 127   ;;  %vm132_vm4 = vcmask 908288   ;;  %vm114_vm5 = vcmask 916480   ;;  %vm96_vm6 = vcmask 1031168   ;;  %vm78_vm7 = vcmask 1039360  }
  0x11   :  { %539 = vrot.lane.b32.xlu2 %v528_v2, %s745_s26  ;;  %295 = vmatpush.msra.mxu2 %v751_v6  ;;  %vm245_vm8 = vcmask 654336   ;;  %s752_s5 = smov [#allocation9]   ;;  %s489_s9 = sshll.u32 %s890_s3, 4  ;;  %s490_s9 = int_to_ptr.hbm [resolvable:$true] %s489_s9 }
  0x12   :  { %446 = vmatpush.msra.mxu3 %v751_v6  ;;  %s487_s6 = sshll.u32 %s752_s5, 4  ;;  %s488_s6 = int_to_ptr.vmem [resolvable:$true] %s487_s6 }
  0x18   :  { %534 = vrot.lane.b32.xlu1 %v533_v5, %s743_s0  ;;  %524 = vrot.lane.b32.xlu0 %v533_v5, %s744_s2 }
  0x19   :  { %544 = vrot.lane.b32.xlu2 %v533_v5, %s745_s26 }
  0x20   :  { %554 = vrot.lane.b32.xlu1 %v533_v5, %s746_s27  ;;  %549 = vrot.lane.b32.xlu0 %v528_v2, %s746_s27 }
  0x21   :  { %559 = vrot.lane.b32.xlu2 %v528_v2, %s747_s28 }
  0x28   :  { %569 = vrot.lane.b32.xlu1 %v528_v2, %s748_s29  ;;  %564 = vrot.lane.b32.xlu0 %v533_v5, %s747_s28 }
  0x29   :  { %574 = vrot.lane.b32.xlu2 %v533_v5, %s748_s29 }
  0x30   :  { %584 = vrot.lane.b32.xlu1 %v533_v5, %s749_s30  ;;  %579 = vrot.lane.b32.xlu0 %v528_v2, %s749_s30 }
  0x31   :  { %589 = vrot.lane.b32.xlu2 %v528_v2, %s750_s4 }
  0x38   :  { %594 = vrot.lane.b32.xlu0 %v533_v5, %s750_s4 }
  0x6b   :  { %v540_v7 = vpop.permute.xlu2 %539 }
  0x6c   :  { %v542_v8 = vunpack.i.h.bf16 %v540_v7  ;;  %v541_v9 = vunpack.i.l.bf16 %v540_v7 }
  0x6e   :  { %v169_v19 = vsel %vm168_vm2, %v541_v9, %v542_v8 }
  0x73   :  { %v545_v16 = vpop.permute.xlu2 %544 }
  0x74   :  { %v547_v20 = vunpack.i.h.bf16 %v545_v16  ;;  %v546_v28 = vunpack.i.l.bf16 %v545_v16 }
  0x76   :  { %v171_v33 = vsel %vm168_vm2, %v546_v28, %v547_v20  ;;  %v170_v34 = vsel %vm168_vm2, %v542_v8, %v546_v28 }
  0x7b   :  { %v560_v27 = vpop.permute.xlu2 %559 }
  0x7c   :  { %v562_v35 = vunpack.i.h.bf16 %v560_v27  ;;  %v561_v36 = vunpack.i.l.bf16 %v560_v27 }
  0x7e   :  { %v133_v46 = vsel %vm132_vm4, %v561_v36, %v562_v35 }
  0x82   :  { %v530_v10 = vpop.permute.xlu1 %529  ;;  %v520_v11 = vpop.permute.xlu0 %519 }
  0x83   :  { %v532_v12 = vunpack.i.h.bf16 %v530_v10  ;;  %v531_v13 = vunpack.i.l.bf16 %v530_v10  ;;  %v522_v14 = vunpack.i.h.bf16 %v520_v11  ;;  %v521_v15 = vunpack.i.l.bf16 %v520_v11  ;;  %v575_v47 = vpop.permute.xlu2 %574 }
  0x84   :  { %v577_v48 = vunpack.i.h.bf16 %v575_v47  ;;  %v576_v49 = vunpack.i.l.bf16 %v575_v47 }
  0x85   :  { %v205_v17 = vsel %vm204_vm0, %v521_v15, %v522_v14  ;;  %v187_v18 = vsel %vm186_vm1, %v531_v13, %v532_v12 }
  0x86   :  { %256 = vmatpush.msra.mxu0 %v205_v17  ;;  %v117_v56 = vsel %vm114_vm5, %v576_v49, %v577_v48 }
  0x88   :  { %257 = vmatpush.msra.mxu0 %v187_v18 }
  0x8a   :  { %v535_v21 = vpop.permute.xlu1 %534  ;;  %v525_v22 = vpop.permute.xlu0 %524  ;;  %258 = vmatpush.msra.mxu0 %v169_v19 }
  0x8b   :  { %v537_v23 = vunpack.i.h.bf16 %v535_v21  ;;  %v536_v24 = vunpack.i.l.bf16 %v535_v21  ;;  %v527_v25 = vunpack.i.h.bf16 %v525_v22  ;;  %v526_v26 = vunpack.i.l.bf16 %v525_v22  ;;  %v590_v61 = vpop.permute.xlu2 %589 }
  0x8c   :  { %v592_v62 = vunpack.i.h.bf16 %v590_v61  ;;  %v591_v63 = vunpack.i.l.bf16 %v590_v61  ;;  %v416_v61 = vld [vmem:[#allocation8] sm:$0xff] }
  0x8d   :  { %v206_v29 = vsel %vm204_vm0, %v522_v14, %v526_v26  ;;  %v207_v30 = vsel %vm204_vm0, %v526_v26, %v527_v25  ;;  %v189_v31 = vsel %vm186_vm1, %v536_v24, %v537_v23  ;;  %v188_v32 = vsel %vm186_vm1, %v532_v12, %v536_v24  ;;  %v214_v14 = vld [vmem:[#allocation6] sm:$0xff] }
  0x8e   :  { %276 = vmatpush.msra.mxu1 %v206_v29  ;;  %296 = vmatpush.msra.mxu2 %v207_v30  ;;  %v79_v13 = vsel %vm78_vm7, %v591_v63, %v592_v62 }
  0x90   :  { %277 = vmatpush.msra.mxu1 %v188_v32  ;;  %297 = vmatpush.msra.mxu2 %v189_v31 }
  0x92   :  { %v555_v37 = vpop.permute.xlu1 %554  ;;  %v550_v38 = vpop.permute.xlu0 %549  ;;  %278 = vmatpush.msra.mxu1 %v170_v34  ;;  %298 = vmatpush.msra.mxu2 %v171_v33 }
  0x93   :  { %v557_v39 = vunpack.i.h.bf16 %v555_v37  ;;  %v556_v40 = vunpack.i.l.bf16 %v555_v37  ;;  %v552_v41 = vunpack.i.h.bf16 %v550_v38  ;;  %v551_v42 = vunpack.i.l.bf16 %v550_v38 }
  0x95   :  { %v151_v43 = vsel %vm150_vm3, %v551_v42, %v552_v41  ;;  %v152_v44 = vsel %vm150_vm3, %v552_v41, %v556_v40  ;;  %v153_v45 = vsel %vm150_vm3, %v556_v40, %v557_v39 }
  0x96   :  { %259 = vmatpush.msra.mxu0 %v151_v43  ;;  %279 = vmatpush.msra.mxu1 %v152_v44 }
  0x97   :  { %299 = vmatpush.msra.mxu2 %v153_v45 }
  0x98   :  { %260 = vmatpush.msra.mxu0 %v133_v46 }
  0x9a   :  { %v570_v50 = vpop.permute.xlu1 %569  ;;  %v565_v51 = vpop.permute.xlu0 %564 }
  0x9b   :  { %v572_v52 = vunpack.i.h.bf16 %v570_v50  ;;  %v571_v53 = vunpack.i.l.bf16 %v570_v50  ;;  %v567_v54 = vunpack.i.h.bf16 %v565_v51  ;;  %v566_v55 = vunpack.i.l.bf16 %v565_v51 }
  0x9d   :  { %v134_v57 = vsel %vm132_vm4, %v562_v35, %v566_v55  ;;  %v135_v58 = vsel %vm132_vm4, %v566_v55, %v567_v54  ;;  %v115_v59 = vsel %vm114_vm5, %v571_v53, %v572_v52  ;;  %v116_v60 = vsel %vm114_vm5, %v572_v52, %v576_v49 }
  0x9e   :  { %280 = vmatpush.msra.mxu1 %v134_v57  ;;  %300 = vmatpush.msra.mxu2 %v135_v58 }
  0x9f   :  { %261 = vmatpush.msra.mxu0 %v115_v59 }
  0xa0   :  { %281 = vmatpush.msra.mxu1 %v116_v60  ;;  %301 = vmatpush.msra.mxu2 %v117_v56 }
  0xa2   :  { %v585_v2 = vpop.permute.xlu1 %584  ;;  %v580_v4 = vpop.permute.xlu0 %579 }
  0xa3   :  { %v587_v5 = vunpack.i.h.bf16 %v585_v2  ;;  %v586_v7 = vunpack.i.l.bf16 %v585_v2  ;;  %v582_v8 = vunpack.i.h.bf16 %v580_v4  ;;  %v581_v9 = vunpack.i.l.bf16 %v580_v4 }
  0xa5   :  { %v97_v10 = vsel %vm96_vm6, %v581_v9, %v582_v8  ;;  %v98_v11 = vsel %vm96_vm6, %v582_v8, %v586_v7  ;;  %v99_v12 = vsel %vm96_vm6, %v586_v7, %v587_v5 }
  0xa6   :  { %262 = vmatpush.msra.mxu0 %v97_v10  ;;  %282 = vmatpush.msra.mxu1 %v98_v11 }
  0xa7   :  { %302 = vmatpush.msra.mxu2 %v99_v12 }
  0xa8   :  { %263 = vmatpush.msra.mxu0 %v79_v13 }
  0xaa   :  { %v595_v15 = vpop.permute.xlu0 %594  ;;  %264 = vmatpush.msra.mxu0 %v782_v0 }
  0xab   :  { %v597_v16 = vunpack.i.h.bf16 %v595_v15  ;;  %v596_v17 = vunpack.i.l.bf16 %v595_v15  ;;  %500 = vmatmul.msk.f32.vlgmr.msra.gmra.mxu0 %vm245_vm8, %v214_v14 }
  0xac   :  { %466 = vmatpush.msrb.mxu0 %v751_v6 }
  0xad   :  { %v80_v18 = vsel %vm78_vm7, %v592_v62, %v596_v17  ;;  %v81_v19 = vsel %vm78_vm7, %v596_v17, %v597_v16 }
  0xae   :  { %283 = vmatpush.msra.mxu1 %v80_v18  ;;  %303 = vmatpush.msra.mxu2 %v81_v19 }
  0xb0   :  { %284 = vmatpush.msra.mxu1 %v784_v1  ;;  %304 = vmatpush.msra.mxu2 %v790_v3 }
  0xb1   :  { %501 = vmatmul.msk.f32.vlgmr.msra.gmra.mxu1 %vm245_vm8, %v214_v14  ;;  %502 = vmatmul.msk.f32.vlgmr.msra.gmra.mxu2 %vm245_vm8, %v214_v14 }
 0x128   :  { %v266_v0 = vpop.f32.mrf.mxu0 }
 0x129   :  { %v309_v20 = vmax.f32 %v266_v0, 0.0 }
 0x12b   :  { %v842_v22 = vmin.f32 %v309_v20, 6.0 }
 0x12e   :  { %v286_v21 = vpop.f32.mrf.mxu1 }
 0x12f   :  { %v310_v6 = vmax.f32 %v286_v21, 0.0 }
 0x131   :  { %v844_v23 = vmin.f32 %v310_v6, 6.0 }
 0x133   :  { %v608_v24 = vpack.i.bf16 %v844_v23, %v842_v22 }
 0x134   :  { %v306_v1 = vpop.f32.mrf.mxu2 }
 0x135   :  { %609 = vrot.lane.b32.xlu0 %v608_v24, %s745_s26  ;;  %604 = vrot.lane.b32.xlu2 %v608_v24, %s743_s0  ;;  %v311_v3 = vmax.f32 %v306_v1, 0.0 }
 0x136   :  { %599 = vrot.lane.b32.xlu1 %v608_v24, %s744_s2 }
 0x137   :  { %v314_v25 = vmin.f32 %v311_v3, 6.0 }
 0x13d   :  { %619 = vrot.lane.b32.xlu0 %v608_v24, %s747_s28  ;;  %624 = vrot.lane.b32.xlu2 %v608_v24, %s748_s29 }
 0x13e   :  { %614 = vrot.lane.b32.xlu1 %v608_v24, %s746_s27 }
 0x145   :  { %634 = vrot.lane.b32.xlu0 %v608_v24, %s750_s4  ;;  %408 = vrot.lane.b32.xlu2 %v314_v25, %s744_s2 }
 0x146   :  { %629 = vrot.lane.b32.xlu1 %v608_v24, %s749_s30 }
 0x14d   :  { %384 = vrot.lane.b32.xlu0 %v314_v25, %s745_s26  ;;  %372 = vrot.lane.b32.xlu2 %v314_v25, %s746_s27 }
 0x14e   :  { %396 = vrot.lane.b32.xlu1 %v314_v25, %s743_s0 }
 0x155   :  { %336 = vrot.lane.b32.xlu0 %v314_v25, %s749_s30  ;;  %348 = vrot.lane.b32.xlu2 %v314_v25, %s748_s29 }
 0x156   :  { %360 = vrot.lane.b32.xlu1 %v314_v25, %s747_s28 }
 0x15e   :  { %324 = vrot.lane.b32.xlu1 %v314_v25, %s750_s4 }
 0x18f   :  { %v605_v26 = vpop.permute.xlu2 %604 }
 0x190   :  { %v607_v30 = vunpack.i.h.bf16 %v605_v26  ;;  %v606_v31 = vunpack.i.l.bf16 %v605_v26 }
 0x192   :  { %v398_v39 = vsel %vm186_vm1, %v606_v31, %v607_v30 }
 0x197   :  { %v625_v27 = vpop.permute.xlu2 %624 }
 0x198   :  { %v627_v47 = vunpack.i.h.bf16 %v625_v27  ;;  %v626_v48 = vunpack.i.l.bf16 %v625_v27 }
 0x19a   :  { %v350_v52 = vsel %vm114_vm5, %v626_v48, %v627_v47 }
 0x19f   :  { %v409_v34 = vpop.permute.xlu2 %408 }
 0x1a7   :  { %v610_v28 = vpop.permute.xlu0 %609  ;;  %v373_v60 = vpop.permute.xlu2 %372 }
 0x1a8   :  { %v600_v29 = vpop.permute.xlu1 %599  ;;  %v612_v35 = vunpack.i.h.bf16 %v610_v28  ;;  %v611_v36 = vunpack.i.l.bf16 %v610_v28 }
 0x1a9   :  { %v602_v32 = vunpack.i.h.bf16 %v600_v29  ;;  %v601_v33 = vunpack.i.l.bf16 %v600_v29 }
 0x1aa   :  { %v386_v41 = vsel %vm168_vm2, %v611_v36, %v612_v35 }
 0x1ab   :  { %v410_v37 = vsel %vm204_vm0, %v601_v33, %v602_v32  ;;  %v411_v38 = vsel %vm204_vm0, %v602_v32, %v409_v34 }
 0x1ac   :  { %447 = vmatpush.msra.mxu3 %v410_v37  ;;  %467 = vmatpush.msrb.mxu0 %v411_v38 }
 0x1ae   :  { %448 = vmatpush.msra.mxu3 %v398_v39 }
 0x1af   :  { %v620_v40 = vpop.permute.xlu0 %619  ;;  %v349_v7 = vpop.permute.xlu2 %348 }
 0x1b0   :  { %v615_v42 = vpop.permute.xlu1 %614  ;;  %449 = vmatpush.msra.mxu3 %v386_v41  ;;  %v622_v43 = vunpack.i.h.bf16 %v620_v40  ;;  %v621_v44 = vunpack.i.l.bf16 %v620_v40  ;;  %v351_v11 = vsel %vm114_vm5, %v627_v47, %v349_v7 }
 0x1b1   :  { %v617_v45 = vunpack.i.h.bf16 %v615_v42  ;;  %v616_v46 = vunpack.i.l.bf16 %v615_v42 }
 0x1b2   :  { %v362_v50 = vsel %vm132_vm4, %v621_v44, %v622_v43 }
 0x1b3   :  { %v374_v49 = vsel %vm150_vm3, %v616_v46, %v617_v45  ;;  %v375_v5 = vsel %vm150_vm3, %v617_v45, %v373_v60 }
 0x1b4   :  { %450 = vmatpush.msra.mxu3 %v374_v49 }
 0x1b6   :  { %451 = vmatpush.msra.mxu3 %v362_v50 }
 0x1b7   :  { %v635_v51 = vpop.permute.xlu0 %634 }
 0x1b8   :  { %v630_v53 = vpop.permute.xlu1 %629  ;;  %452 = vmatpush.msra.mxu3 %v350_v52  ;;  %v637_v54 = vunpack.i.h.bf16 %v635_v51  ;;  %v636_v55 = vunpack.i.l.bf16 %v635_v51 }
 0x1b9   :  { %v632_v56 = vunpack.i.h.bf16 %v630_v53  ;;  %v631_v57 = vunpack.i.l.bf16 %v630_v53 }
 0x1ba   :  { %v326_v59 = vsel %vm78_vm7, %v636_v55, %v637_v54 }
 0x1bb   :  { %v338_v58 = vsel %vm96_vm6, %v631_v57, %v632_v56 }
 0x1bc   :  { %453 = vmatpush.msra.mxu3 %v338_v58 }
 0x1be   :  { %454 = vmatpush.msra.mxu3 %v326_v59 }
 0x1bf   :  { %v385_v62 = vpop.permute.xlu0 %384 }
 0x1c0   :  { %v397_v63 = vpop.permute.xlu1 %396  ;;  %455 = vmatpush.msra.mxu3 %v842_v22  ;;  %v387_v4 = vsel %vm168_vm2, %v612_v35, %v385_v62 }
 0x1c1   :  { %v399_v2 = vsel %vm186_vm1, %v607_v30, %v397_v63  ;;  %503 = vmatmul.msk.f32.vlgmr.msra.gmra.mxu3 %vm245_vm8, %v416_v61 }
 0x1c2   :  { %468 = vmatpush.msrb.mxu0 %v399_v2 }
 0x1c4   :  { %469 = vmatpush.msrb.mxu0 %v387_v4 }
 0x1c6   :  { %470 = vmatpush.msrb.mxu0 %v375_v5 }
 0x1c7   :  { %v337_v10 = vpop.permute.xlu0 %336 }
 0x1c8   :  { %v361_v8 = vpop.permute.xlu1 %360  ;;  %v339_v12 = vsel %vm96_vm6, %v632_v56, %v337_v10 }
 0x1c9   :  { %v363_v9 = vsel %vm132_vm4, %v622_v43, %v361_v8 }
 0x1ca   :  { %471 = vmatpush.msrb.mxu0 %v363_v9 }
 0x1cc   :  { %472 = vmatpush.msrb.mxu0 %v351_v11 }
 0x1ce   :  { %473 = vmatpush.msrb.mxu0 %v339_v12 }
 0x1d0   :  { %v325_v13 = vpop.permute.xlu1 %324 }
 0x1d1   :  { %v327_v14 = vsel %vm78_vm7, %v637_v54, %v325_v13 }
 0x1d2   :  { %474 = vmatpush.msrb.mxu0 %v327_v14 }
 0x1d4   :  { %475 = vmatpush.msrb.mxu0 %v844_v23 }
 0x1d5   :  { %504 = vmatmul.msk.f32.vlgmr.msrb.gmra.mxu0 %vm245_vm8, %v416_v61 }
 0x244   :  { %v457_v15 = vpop.f32.mrf.mxu3 }
 0x245   :  { %480 = vst [vmem:[#allocation9] sm:$0xff] %v457_v15 }
 0x252   :  { %v477_v16 = vpop.f32.mrf.mxu0 }
 0x253   :  { %481 = vst [vmem:[#allocation9 + $0x8] sm:$0xff] %v477_v16 }
 0x254   :  { %492 = dma.vmem_to_hbm [thread:$0]  %s488_s6, 256, %s490_s9, [#allocation5]  }
 0x255   :  { %738 = dma.done.wait [#allocation5], 256  }
 0x256   :  { %739 = vsyncadd [#allocation5], 4294967040 }
 0x257   :  { %497 = vsyncpa [#allocation4], 1 }
 0x258   :  { %498 = vsyncpa [#allocation7], 1 }
 0x259   :  { %499 = vsyncpa [#allocation5], 1 }

</bundles_post_ra>
